<compile_context>
chip_gen: v6e
topology: v6e:2x2x1
jax: 0.10.0
libtpu: 0.0.40
codegen_flags: <defaults>
</compile_context>

<pallas_src>
import numpy as np
import jax
import jax.numpy as jnp
from jax.experimental import pallas as pl
from jax.experimental.pallas import tpu as pltpu


def _round_up(x, m):
    return (x + m - 1) // m * m


def _vmem_capacity_bytes(default=64 << 20):
    """Physical VMEM per TensorCore (64 MiB v7x, 128 MiB v5e/v6e); safe fallback."""
    try:
        cap = getattr(pltpu.get_tpu_info(), "vmem_capacity_bytes", None)
        if cap:
            return int(cap)
    except Exception:
        pass
    return default


def _attn_pool_kernel(x_ref, len_ref, w_ref, b_ref, v_ref, o_ref):
    """level_attention over a (BN, L, D) block of items.

    u    = tanh(x @ W + b)        one folded (BN*L, D)@(D, Dw) bf16 MXU matmul, f32 acc
    s    = <u, v>                 VPU multiply + lane reduction, (BN, L) lane-dense
    attn = masked softmax(s)      mask built in-kernel from per-item lengths
    out  = sum_L attn * x         VPU/XLU weighted sum, lane-dense (BN, D) slab
    The scalar bias of the second Linear is dropped: softmax is shift-invariant.
    """
    BN, L, D = x_ref.shape
    Dw = w_ref.shape[1]

    # --- one big MXU matmul over the folded batch*token rows (bf16 in, f32 out) ---
    u = jnp.tanh(
        jnp.dot(x_ref[...].reshape(BN * L, D), w_ref[...],
                preferred_element_type=jnp.float32)
        + b_ref[...])                                                 # (BN*L, Dw) f32

    # --- score: broadcast-multiply + lane reduction (keeps the MXU free) -------
    s = jnp.sum(u.reshape(BN, L, Dw) * v_ref[...], axis=-1)           # (BN, L) f32

    # --- masked, lane-dense softmax over the token axis ------------------------
    token = jax.lax.broadcasted_iota(jnp.int32, (BN, L), 1)
    s = jnp.where(token < len_ref[...], s, -1e30)                     # len_ref: (BN, 1)
    mx = jnp.max(s, axis=-1, keepdims=True)                           # (BN, 1)
    e = jnp.exp(s - mx)                                               # masked positions -> exactly 0
    denom = jnp.sum(e, axis=-1, keepdims=True)                        # >= 1 always -> no NaN
    attn = e * pl.reciprocal(denom, approx=True)                      # EUP fast path

    # --- weighted-sum pooling on the VPU/XLU (re-read x_ref, don't keep it live) ---
    pooled = jnp.sum(attn[:, :, None] * x_ref[...], axis=1)           # (BN, D) f32
    o_ref[...] = pooled.astype(o_ref.dtype)


def attn_pool(x, lengths, W, b, v, *, bn_max=1024):
    """Masked attention pooling (level_attention) over the token axis.

    x:       (N, L, D) token sequences (padded along L)
    lengths: (N,) int  number of valid tokens per item
    W, b, v: level_attention parameters; W (D, Dw), b (1, Dw), v row (1, Dw)
    returns: (N, D) f32 pooled embeddings
    """
    N, L, D = x.shape
    Dw = W.shape[1]

    # bf16 operands: halves x's HBM bytes and enables the native bf16 MXU path.
    x = x.astype(jnp.bfloat16)
    W = W.astype(jnp.bfloat16)
    b = b.astype(jnp.bfloat16)
    v = v.astype(jnp.bfloat16)

    # Pad only the ragged tail (tokens to a sublane multiple, items to 8) with a
    # single jnp.pad — no full-size zeros+scatter materialization of x.
    Lp = _round_up(max(L, 1), 8)
    Np = _round_up(N, 8)
    if (Np, Lp) != (N, L):
        x = jnp.pad(x, ((0, Np - N), (0, Lp - L), (0, 0)))
    len_p = jnp.zeros((Np, 1), jnp.int32).at[:N, 0].set(jnp.asarray(lengths, jnp.int32))

    # --- generation-aware block sizing ---------------------------------------
    vmem_cap = _vmem_capacity_bytes()                     # 64 MiB (v7x) / 128 MiB (v5e, v6e)
    vmem_limit = min(vmem_cap * 3 // 4, 96 << 20)         # scoped limit: 48 MiB v7x, 96 MiB v5e/v6e
    fixed = 2 * (D * Dw * 2 + 2 * Dw * 2) + (8 << 20)     # 2x bf16 W/b/v + Mosaic scratch headroom
    per_item = (2 * Lp * D * 2                            # x block, double-buffered, bf16
                + Lp * Dw * 4                             # u (tanh) temp, f32
                + Lp * max(D, Dw) * 4                     # pooling / intermediate temp slack, f32
                + 2 * D * 4)                              # output block, double-buffered, f32
    # TODO(synk): for very large Dw (e.g. 768 with huge BN), tile Dw in-kernel with a
    # short unrolled loop over 256-wide column slabs to bound the f32 u temp further.
    bn = (vmem_limit - fixed) // per_item
    bn = max(8, min(bn_max, bn // 8 * 8))
    bn = min(bn, Np)
    # keep >= 2 grid steps where possible so v7x's two TensorCores both get work
    if Np >= 16:
        bn = min(bn, max(8, (Np // 2) // 8 * 8))
    # choose bn to divide Np exactly -> no ragged tail block, no extra N padding
    while Np % bn != 0:
        bn -= 8

    out = pl.pallas_call(
        _attn_pool_kernel,
        out_shape=jax.ShapeDtypeStruct((Np, D), jnp.float32),
        grid=(Np // bn,),
        in_specs=[
            pl.BlockSpec((bn, Lp, D), lambda i: (i, 0, 0)),   # token block (bf16)
            pl.BlockSpec((bn, 1), lambda i: (i, 0)),          # valid lengths (replaces mask DMA)
            pl.BlockSpec((D, Dw), lambda i: (0, 0)),          # W (resident block)
            pl.BlockSpec((1, Dw), lambda i: (0, 0)),          # b
            pl.BlockSpec((1, Dw), lambda i: (0, 0)),          # v (row layout)
        ],
        out_specs=pl.BlockSpec((bn, D), lambda i: (i, 0)),
        compiler_params=pltpu.CompilerParams(
            # parallel item axis lets v7x split grid steps across its 2 TensorCores
            dimension_semantics=("parallel",),
            vmem_limit_bytes=int(vmem_limit),
        ),
    )(x, len_p, W, b, v)
    return out[:N]


if __name__ == "__main__":
    key = jax.random.PRNGKey(0)
    B, S = 2, 3          # paragraphs, sentences per paragraph
    D, Dw = 128, 128     # hidden / attention width (768 in the original); multiple of 128 for lane-dense stores
    T = 8                # encoded pair-sequence length

    # pairs enumerated exactly like PairEncoder: (paragraph z, sentence j, sentence k), j != k
    pairs = [(z, j, k) for z in range(B) for j in range(S) for k in range(S) if j != k]
    batch_index_to_pair_dict = {i: p for i, p in enumerate(pairs)}
    P = len(pairs)       # B * S * (S-1) = 12

    # stand-in for the tokenizer-derived [SEP] positions of each encoded pair
    pair_information = [(3 if i % 2 == 0 else 4, 7) for i in range(P)]

    # TODO(synk): the HuggingFace BERT/ALBERT PairEncoder (string tokenization +
    # pretrained transformer) has no Pallas equivalent; its output is replaced by a
    # deterministic synthetic tensor of the same shape [num_pairs, seq, hidden].
    k_enc, k_w1, k_b1, k_v1, k_w2, k_b2, k_v2 = jax.random.split(key, 7)
    all_output = jax.random.normal(k_enc, (P, T, D), jnp.float32)

    # level_attention parameters (PyTorch Linear semantics y = x @ W + b)
    def make_params(kw, kb, kv, cbias):
        W = jax.random.normal(kw, (D, Dw), jnp.float32) / np.sqrt(D)
        b = jax.random.normal(kb, (1, Dw), jnp.float32) * 0.01
        v = jax.random.normal(kv, (1, Dw), jnp.float32) / np.sqrt(Dw)  # row layout for the kernel
        c = jnp.full((1, 1), cbias, jnp.float32)                       # dropped in-kernel (softmax shift-invariant)
        return W, b, v, c

    W1, b1, v1, c1 = make_params(k_w1, k_b1, k_v1, 0.05)
    W2, b2, v2, c2 = make_params(k_w2, k_b2, k_v2, -0.05)

    # pair_embeddings = [CLS] token of every pair
    pair_embeddings = all_output[:, 0, :]

    # --- level one: device-side gather of the two sentence spans of every pair ---
    span_pair, span_start, span_lens = [], [], []
    for i, (fs, ss) in enumerate(pair_information):
        assert fs > 1 and fs + 1 < ss
        span_pair += [i, i]
        span_start += [1, fs + 1]
        span_lens += [fs - 1, ss - fs - 1]
    L1 = _round_up(max(span_lens), 8)
    tok_idx = np.clip(np.asarray(span_start)[:, None] + np.arange(L1)[None, :], 0, T - 1)
    spans = all_output[jnp.asarray(span_pair, jnp.int32)[:, None],
                       jnp.asarray(tok_idx, jnp.int32), :]             # (2P, L1, D), on device
    span_lens = jnp.asarray(span_lens, jnp.int32)

    lvl1 = attn_pool(spans, span_lens, W1, b1, v1)                     # (2P, D)
    pair_after_level_one = lvl1.reshape(P, 2, D)

    # --- grouping glue: data[z][sent] collects embeddings from every pair containing the sentence ---
    groups = {}
    for i, (z, j, k) in enumerate(pairs):
        groups.setdefault((z, j), []).append((i, 0))
        groups.setdefault((z, k), []).append((i, 1))
    G = 2 * (S - 1)                                                    # every group has 2*(S-1) members
    gather_idx = np.zeros((B * S, G, 2), np.int32)
    for z in range(B):
        for j in range(S):
            for g, (pi, slot) in enumerate(groups[(z, j)]):
                gather_idx[z * S + j, g] = (pi, slot)
    gather_idx = jnp.asarray(gather_idx)
    grp = pair_after_level_one[gather_idx[..., 0], gather_idx[..., 1], :]   # (B*S, G, D), on device
    grp_lens = jnp.full((B * S,), G, jnp.int32)

    # --- level two ---
    lvl2 = attn_pool(grp, grp_lens, W2, b2, v2)                        # (B*S, D)
    data_after_level_two = lvl2.reshape(B, S, D)

    jax.block_until_ready((pair_embeddings, data_after_level_two))

    # pure-JAX f32 reference (keeps the scalar bias c to demonstrate shift-invariance)
    def ref_pool(x, lens, W, b, v, c):
        Lr = x.shape[1]
        m = jnp.arange(Lr)[None, :] < lens[:, None]
        u = jnp.tanh(jnp.einsum('bld,de->ble', x, W, precision='highest') + b)
        s = jnp.einsum('ble,oe->blo', u, v, precision='highest')[..., 0] + c[0, 0]
        s = jnp.where(m, s, -1e30)
        e = jnp.exp(s - s.max(axis=1, keepdims=True))
        a = e / e.sum(axis=1, keepdims=True)
        return jnp.einsum('bl,bld->bd', a, x, precision='highest')

    # tolerances relaxed for the bf16 operands / approx reciprocal (f32 reference);
    # the level-two check is end-to-end, so the level-one bf16 error compounds.
    ref1 = ref_pool(spans, span_lens, W1, b1, v1, c1).reshape(P, 2, D)
    ref_grp = ref1[gather_idx[..., 0], gather_idx[..., 1], :]
    ref2 = ref_pool(ref_grp, grp_lens, W2, b2, v2, c2).reshape(B, S, D)
    np.testing.assert_allclose(np.asarray(pair_after_level_one), np.asarray(ref1),
                               rtol=2e-2, atol=2e-2)
    np.testing.assert_allclose(np.asarray(data_after_level_two), np.asarray(ref2),
                               rtol=5e-2, atol=5e-2)
    # isolated level-two check (no compounded level-one error): reference applied
    # to the kernel's own level-one output
    ref2_iso = ref_pool(grp, grp_lens, W2, b2, v2, c2).reshape(B, S, D)
    np.testing.assert_allclose(np.asarray(data_after_level_two), np.asarray(ref2_iso),
                               rtol=2e-2, atol=2e-2)

    print("KERNEL_OK")
</pallas_src>

<mosaic_0001>
module attributes {stable_mosaic.version = 11 : i64} {
  func.func @_attn_pool_kernel(%arg0: i32, %arg1: memref<8x8x128xbf16, #tpu.memory_space<vmem>>, %arg2: memref<8x1xi32, #tpu.memory_space<vmem>>, %arg3: memref<128x128xbf16, #tpu.memory_space<vmem>>, %arg4: memref<1x128xbf16, #tpu.memory_space<vmem>>, %arg5: memref<1x128xbf16, #tpu.memory_space<vmem>>, %arg6: memref<8x128xf32, #tpu.memory_space<vmem>>) attributes {dimension_semantics = [#tpu.dimension_semantics<parallel>], iteration_bounds = array<i64: 3>, scalar_prefetch = 0 : i64, scratch_operands = 0 : i64, tpu.core_type = #tpu.core_type<tc>, window_params = [{transform_indices = @transform_0, window_bounds = array<i64: 8, 8, 128>}, {transform_indices = @transform_1, window_bounds = array<i64: 8, 1>}, {pipeline_mode = #tpu.pipeline_mode<synchronous>, transform_indices = @transform_2, window_bounds = array<i64: 128, 128>}, {pipeline_mode = #tpu.pipeline_mode<synchronous>, transform_indices = @transform_3, window_bounds = array<i64: 1, 128>}, {pipeline_mode = #tpu.pipeline_mode<synchronous>, transform_indices = @transform_4, window_bounds = array<i64: 1, 128>}, {transform_indices = @transform_5, window_bounds = array<i64: 8, 128>}]} {
    %c0 = arith.constant 0 : index
    %c0_0 = arith.constant 0 : index
    %c0_1 = arith.constant 0 : index
    %0 = vector.load %arg1[%c0, %c0_0, %c0_1] : memref<8x8x128xbf16, #tpu.memory_space<vmem>>, vector<8x8x128xbf16>
    %1 = vector.shape_cast %0 : vector<8x8x128xbf16> to vector<64x128xbf16>
    %c0_2 = arith.constant 0 : index
    %c0_3 = arith.constant 0 : index
    %2 = vector.load %arg3[%c0_2, %c0_3] : memref<128x128xbf16, #tpu.memory_space<vmem>>, vector<128x128xbf16>
    %cst = arith.constant dense<0.000000e+00> : vector<64x128xf32>
    %3 = tpu.matmul %1, %2, %cst {dimension_numbers = #tpu.dot_dimension_numbers<[1], [0], [0], [1], [0, 0, 1, 1], [], []>} : vector<64x128xbf16>, vector<128x128xbf16>, vector<64x128xf32> -> vector<64x128xf32>
    %c0_4 = arith.constant 0 : index
    %c0_5 = arith.constant 0 : index
    %4 = vector.load %arg4[%c0_4, %c0_5] : memref<1x128xbf16, #tpu.memory_space<vmem>>, vector<1x128xbf16>
    %5 = arith.extf %4 : vector<1x128xbf16> to vector<1x128xf32>
    %6 = vector.broadcast %5 : vector<1x128xf32> to vector<64x128xf32>
    %7 = arith.addf %3, %6 : vector<64x128xf32>
    %8 = math.tanh %7 : vector<64x128xf32>
    %9 = vector.shape_cast %8 : vector<64x128xf32> to vector<8x8x128xf32>
    %c0_6 = arith.constant 0 : index
    %c0_7 = arith.constant 0 : index
    %10 = vector.load %arg5[%c0_6, %c0_7] : memref<1x128xbf16, #tpu.memory_space<vmem>>, vector<1x128xbf16>
    %11 = arith.extf %10 : vector<1x128xbf16> to vector<1x128xf32>
    %12 = vector.shape_cast %11 : vector<1x128xf32> to vector<1x1x128xf32>
    %13 = vector.broadcast %12 : vector<1x1x128xf32> to vector<8x8x128xf32>
    %14 = arith.mulf %9, %13 : vector<8x8x128xf32>
    %cst_8 = arith.constant dense<0.000000e+00> : vector<8x8xf32>
    %15 = vector.multi_reduction <add>, %14, %cst_8 [2] : vector<8x8x128xf32> to vector<8x8xf32>
    %16 = tpu.iota {dimensions = array<i32: 1>} : vector<8x8xi32>
    %c0_9 = arith.constant 0 : index
    %c0_10 = arith.constant 0 : index
    %17 = vector.load %arg2[%c0_9, %c0_10] : memref<8x1xi32, #tpu.memory_space<vmem>>, vector<8x1xi32>
    %18 = vector.broadcast %17 : vector<8x1xi32> to vector<8x8xi32>
    %19 = arith.cmpi slt, %16, %18 : vector<8x8xi32>
    %cst_11 = arith.constant -1.000000e+30 : f32
    %20 = vector.broadcast %cst_11 : f32 to vector<8x8xf32>
    %21 = arith.select %19, %15, %20 : vector<8x8xi1>, vector<8x8xf32>
    %cst_12 = arith.constant dense<0xFF800000> : vector<8xf32>
    %22 = vector.multi_reduction <maximumf>, %21, %cst_12 [1] : vector<8x8xf32> to vector<8xf32>
    %23 = vector.shape_cast %22 : vector<8xf32> to vector<8x1xf32>
    %24 = vector.broadcast %23 : vector<8x1xf32> to vector<8x8xf32>
    %25 = arith.subf %21, %24 : vector<8x8xf32>
    %26 = math.exp %25 : vector<8x8xf32>
    %cst_13 = arith.constant dense<0.000000e+00> : vector<8xf32>
    %27 = vector.multi_reduction <add>, %26, %cst_13 [1] : vector<8x8xf32> to vector<8xf32>
    %28 = vector.shape_cast %27 : vector<8xf32> to vector<8x1xf32>
    %29 = tpu.reciprocal %28 {approx = true} : vector<8x1xf32> -> vector<8x1xf32>
    %30 = vector.broadcast %29 : vector<8x1xf32> to vector<8x8xf32>
    %31 = arith.mulf %26, %30 : vector<8x8xf32>
    %32 = vector.shape_cast %31 : vector<8x8xf32> to vector<8x8x1xf32>
    %c0_14 = arith.constant 0 : index
    %c0_15 = arith.constant 0 : index
    %c0_16 = arith.constant 0 : index
    %33 = vector.load %arg1[%c0_14, %c0_15, %c0_16] : memref<8x8x128xbf16, #tpu.memory_space<vmem>>, vector<8x8x128xbf16>
    %34 = arith.extf %33 : vector<8x8x128xbf16> to vector<8x8x128xf32>
    %35 = vector.broadcast %32 : vector<8x8x1xf32> to vector<8x8x128xf32>
    %36 = arith.mulf %35, %34 : vector<8x8x128xf32>
    %cst_17 = arith.constant dense<0.000000e+00> : vector<8x128xf32>
    %37 = vector.multi_reduction <add>, %36, %cst_17 [1] : vector<8x8x128xf32> to vector<8x128xf32>
    %c0_18 = arith.constant 0 : index
    %c0_19 = arith.constant 0 : index
    %38 = vector.load %arg6[%c0_18, %c0_19] : memref<8x128xf32, #tpu.memory_space<vmem>>, vector<8x128xf32>
    tpu.vector_store %arg6[%c0_18, %c0_19], %37 {strides = array<i32>} : memref<8x128xf32, #tpu.memory_space<vmem>>, vector<8x128xf32>,
    return
  }
  func.func @transform_0(%arg0: i32) -> (i32, i32, i32) {
    %c0_i32 = arith.constant 0 : i32
    %c0_i32_0 = arith.constant 0 : i32
    %c0_i32_1 = arith.constant 0 : i32
    return %arg0, %c0_i32, %c0_i32_0 : i32, i32, i32
  }
  func.func @transform_1(%arg0: i32) -> (i32, i32) {
    %c0_i32 = arith.constant 0 : i32
    %c0_i32_0 = arith.constant 0 : i32
    return %arg0, %c0_i32 : i32, i32
  }
  func.func @transform_2(%arg0: i32) -> (i32, i32) {
    %c0_i32 = arith.constant 0 : i32
    %c0_i32_0 = arith.constant 0 : i32
    %c0_i32_1 = arith.constant 0 : i32
    return %c0_i32, %c0_i32_0 : i32, i32
  }
  func.func @transform_3(%arg0: i32) -> (i32, i32) {
    %c0_i32 = arith.constant 0 : i32
    %c0_i32_0 = arith.constant 0 : i32
    %c0_i32_1 = arith.constant 0 : i32
    return %c0_i32, %c0_i32_0 : i32, i32
  }
  func.func @transform_4(%arg0: i32) -> (i32, i32) {
    %c0_i32 = arith.constant 0 : i32
    %c0_i32_0 = arith.constant 0 : i32
    %c0_i32_1 = arith.constant 0 : i32
    return %c0_i32, %c0_i32_0 : i32, i32
  }
  func.func @transform_5(%arg0: i32) -> (i32, i32) {
    %c0_i32 = arith.constant 0 : i32
    %c0_i32_0 = arith.constant 0 : i32
    return %arg0, %c0_i32 : i32, i32
  }
}

</mosaic_0001>

<bundles_post_ra>
// kernel: tpu_custom_call.1
= control target key start
LH: loop header
LB: loop body
LE: loop exit
PB: predicated region body
PF: predicated region fallthrough
CT: control target
= control target key end

     0   :  { %10 = vsyncpa [#allocation3], 0  ;;  %s1381_s0 = inlined_call_operand.hbm [shape: bf16[24,8,128], index: 0, kind: input, shape index: {}]   ;;  %s1382_s1 = inlined_call_operand.vmem [shape: s32[24,1], index: 1, kind: input, shape index: {}]   ;;  %s1383_s2 = inlined_call_operand.hbm [shape: bf16[128,128], index: 2, kind: input, shape index: {}]   ;;  %s1384_s3 = inlined_call_operand.vmem [shape: bf16[1,128], index: 3, kind: input, shape index: {}]   ;;  %s1385_s4 = inlined_call_operand.vmem [shape: bf16[1,128], index: 4, kind: input, shape index: {}]   ;;  %s1386_s5 = inlined_call_operand.hbm [shape: f32[24,128], index: 5, kind: output, shape index: {}]  }
   0x1   :  { %12 = vsyncpa [#allocation3 + $0x1], 0 }
   0x2   :  { %13 = vsyncpa [#allocation6], 0 }
   0x3   :  { %14 = vsyncpa [#allocation4], 0 }
   0x4   :  { %16 = vsyncpa [#allocation4 + $0x1], 0  ;;  %s1138_s18 = smov 0   ;;  %s1140_s19 = smov 0  }
   0x5   :  { %s1142_s20 = smov 0   ;;  %s1144_s21 = smov 0  }
   0x6 LB: > { %s1159_s22 = sadd.s32 4294967295, %s1100_s21   ;;  %s800_s23 = sadd.s32 4294967294, %s1100_s21   ;;  %s1100_s21 = sphi %s1144_s21, %s1409_s21   ;;  %s1096_s20 = sphi %s1142_s20, %s1408_s20   ;;  %s1092_s19 = sphi %s1140_s19, %s1407_s19   ;;  %s1088_s18 = sphi %s1138_s18, %s1406_s18  }
   0x7   : > { %p42_p0 = scmp.ne.s32.totalorder %s1092_s19, %s1088_s18  ;;  %p1387_p1 = scmp.eq.s32.totalorder %s1159_s22, 0 }
   0x8   : > { %p161_p3 = scmp.eq.s32.totalorder %s800_s23, 2  ;;  %p801_p5 = scmp.ge.s32.totalorder %s1100_s21, 1 }
   0x9   : > { %p1168_p4 = por %p1387_p1, %p42_p0  ;;  %p168_p7 = scmp.lt.s32.totalorder %s1100_s21, 4 }
   0xa   : > { %p1173_p6 = por %p161_p3, %p42_p0  ;;  %s1102_s27 = smov [#allocation5]  }
   0xb   : > { %s1392_s24 = scalar_select %p1168_p4, 1, 0 }
   0xc   : > { %s1393_s25 = scalar_select %p1173_p6, 1, 0 }
   0xd   : > { %p1178_p8 = pnand %p801_p5, %p168_p7  ;;  %s180_s28 = sshll.u32 %s1102_s27, 4  ;;  %s181_s28 = int_to_ptr.vmem [resolvable:$true] %s180_s28 }
   0xe   : > { %s1191_s30 = sadd.s32 1, %s1100_s21   ;;  %s29_s6 = sadd.s32 1, %s1096_s20 }
   0xf   : > { %s1394_s26 = scalar_select %p1178_p8, 1, 0 }
  0x10   : > { %p889_p9 = pneg %p1178_p8  ;;  %s26_s7 = ssub.s32 %s1100_s21, %s1191_s30 }
  0x11   : > { %s989_s8 = scalar_lea.vmem %s181_s28, 1024  ;;  %p997_p3 = scmp.lt.s32.totalorder %s181_s28, %s181_s28 }
  0x12   : > { %p1186_p10 = pnand %p889_p9, %p1387_p1  ;;  %p990_p12 = scmp.ne.s32.totalorder %s181_s28, %s989_s8 }
  0x13   : > { %p998_p5 = scmp.lt.s32.totalorder %s989_s8, %s989_s8 }
  0x14   : > { %p980_p11 = pneg %p1186_p10 }
  0x15   : > { %p999_p7 = por %p998_p5, %p997_p3 }
  0x16   : > { %p992_p13 = pnand %p990_p12, %p980_p11 }
  0x18   : > { %p993_p0 = pneg %p992_p13 }
  0x1a   : > { %p1000_p2 = pnand %p999_p7, %p993_p0 }
  0x1c   : > { %1003 = shalt.err (!%p1000_p2)
}
  0x1d   : > { %s1388_s9 = smov 64   ;;  %s1104_s10 = smov 4  }
  0x1e   : > { %892 = dma.hbm_to_vmem [thread:$0]  (!%p1186_p10), %s1383_s2, 1024, %s181_s28, [#allocation6], %s1388_s9, %s1388_s9, %s1104_s10  }
  0x1f   : > { %p27_p2 = scmp.eq.s32.totalorder %s26_s7, 0  ;;  %p36_p9 = scmp.ne.s32.totalorder %s1096_s20, %s1092_s19 }
  0x20   : > { %p37_p11 = scmp.eq.s32.totalorder %s1100_s21, 0  ;;  %p902_p12 = scmp.lt.s32.totalorder %s1100_s21, 3 }
  0x21   : > { %s1211_s13 = scalar_select %p27_p2, %s1096_s20, %s29_s6  }
  0x22   : > { %p38_p13 = por %p37_p11, %p36_p9  ;;  %p1396_p0 = scmp.eq.s32.totalorder %s1159_s22, 2 }
  0x23   : > { %s200_s15 = sand.u32 1, %s1096_s20   ;;  %s828_s16 = sshll.u32 %s1100_s21, 9 }
  0x24   : > { %p1215_p3 = por %p1396_p0, %p36_p9  ;;  %s804_s17 = sshll.u32 %s200_s15, 5 }
  0x25   : > { %s1224_s29 = scalar_lea.hbm %s1381_s0, %s828_s16  ;;  %s204_s28 = scalar_lea.vmem [#allocation2], %s804_s17 }
  0x26   : > { %s1397_s14 = scalar_select %p1215_p3, 1, 0 }
  0x27   : > { %s211_s6 = sshll.u32 %s204_s28, 4  ;;  %p1226_p10 = pnand %p902_p12, %p38_p13  ;;  %s1230_s6 = int_to_ptr.vmem [resolvable:$true] %s211_s6 }
  0x28   : > { %s1232_s8 = scalar_lea.sflag [#allocation3], %s200_s15  ;;  %s1004_s11 = scalar_lea.hbm %s1224_s29, 512 }
  0x29   : > { %p1005_p5 = scmp.ne.s32.totalorder %s1224_s29, %s1004_s11  ;;  %p1006_p7 = pneg %p1226_p10 }
  0x2a   : > { %s1009_s17 = scalar_lea.hbm %s1381_s0, 1536  ;;  %p1010_p11 = scmp.lt.s32.totalorder %s1224_s29, %s1381_s0 }
  0x2b   : > { %p1007_p2 = pnand %p1006_p7, %p1005_p5  ;;  %p1011_p12 = scmp.lt.s32.totalorder %s1009_s17, %s1004_s11 }
  0x2d   : > { %p1008_p9 = pneg %p1007_p2  ;;  %p1012_p13 = por %p1011_p12, %p1010_p11 }
  0x2f   : > { %p1013_p0 = pnand %p1012_p13, %p1008_p9 }
  0x31   : > { %1016 = shalt.err (!%p1013_p0)
}
  0x32   : > { %s1017_s15 = scalar_lea.vmem %s1230_s6, 512  ;;  %s1105_s28 = smov [#allocation2]  }
  0x33   : > { %p1018_p1 = scmp.ne.s32.totalorder %s1230_s6, %s1017_s15  ;;  %s1022_s9 = sshll.u32 %s1105_s28, 4  ;;  %s1023_s9 = int_to_ptr.vmem [resolvable:$false] %s1022_s9 }
  0x34   : > { %s1024_s12 = scalar_lea.vmem %s1023_s9, 1024  ;;  %p1025_p2 = scmp.lt.s32.totalorder %s1230_s6, %s1023_s9 }
  0x35   : > { %p1020_p6 = pnand %p1018_p1, %p1006_p7  ;;  %p1026_p3 = scmp.lt.s32.totalorder %s1024_s12, %s1017_s15 }
  0x37   : > { %p1021_p5 = pneg %p1020_p6  ;;  %p1027_p4 = por %p1026_p3, %p1025_p2 }
  0x39   : > { %p1028_p8 = pnand %p1027_p4, %p1021_p5 }
  0x3b   : > { %1031 = shalt.err (!%p1028_p8)
}
  0x3c   : > { %s1399_s11 = smov 64   ;;  %p1400_p1 = scmp.ne.s32.totalorder %s1394_s26, 0 }
  0x3d   : > { %896 = dma.hbm_to_vmem [thread:$0]  (!%p1226_p10), %s1224_s29, 512, %s1230_s6, %s1232_s8, %s1399_s11, %s1399_s11, %s1104_s10  }
  0x3e   : > { %230 = sbr.rel (%p1400_p1) target bundleno = 957 (0x3bd), region = 40  ;;  %s1259_s16 = sand.u32 (!%p1400_p1), 1, %s1092_s19  }
  0x3f   : > { %s808_s9 = sshll.u32 (!%p1400_p1), %s1259_s16, 5  ;;  %s233_s17 = scalar_lea.sflag (!%p1400_p1), [#allocation3], %s1259_s16 }
  0x40   : > { %s1263_s23 = scalar_lea.vmem (!%p1400_p1), [#allocation2], %s808_s9  ;;  %p1401_p4 = scmp.ne.s32.totalorder (!%p1400_p1), %s1392_s24, 0 }
  0x43   : > { %1075 = dma.done.wait (%p1401_p4), %s233_s17, 512  }
  0x44   : > { %1077 = vsyncadd (%p1401_p4), %s233_s17, 4294966784  ;;  %p1402_p6 = scmp.eq.s32.totalorder %s1159_s22, 0 }
  0x46   : > { %1079 = dma.done.wait (%p1402_p6), [#allocation6], 1024   ;;  %p1403_p8 = pmov %p1402_p6 }
  0x47   : > { %v942_v0 = vld [vmem:[#allocation5 + $0x38] sm:$0xff]   ;;  %v943_v1 = vld [vmem:[#allocation5 + $0x30] sm:$0xff]   ;;  %v944_v2 = vld [vmem:[#allocation5 + $0x28] sm:$0xff]   ;;  %v1106_v12 = vmov 0   ;;  %v303_v13 = vlaneseq  ;;  %p272_p3 = scmp.lt.s32.totalorder %s1159_s22, 2  ;;  %vm529_vm0 = vcmask 1041409  }
  0x48   : > { %1081 = vsyncadd (%p1403_p8), [#allocation6], 4294966272  ;;  %841 = vmatprep.subr.bf16.mxu0 %v942_v0  ;;  %865 = vmatprep.subr.bf16.mxu1 %v942_v0  ;;  %v945_v3 = vld [vmem:[#allocation5 + $0x20] sm:$0xff]   ;;  %v1277_v5 = vld [vmem:[%s1263_s23 + $0x10] sm:$0xff]   ;;  %vm531_vm1 = vcmask 1042434   ;;  %vm533_vm2 = vcmask 1043459  }
  0x49   : > { %842 = vmatpush3.bf16.msra.mxu0 %v942_v0  ;;  %873 = vmatpush3.bf16.msra.mxu1 %v942_v0  ;;  %v1274_v4 = vld [vmem:[%s1263_s23] sm:$0xff]   ;;  %v946_v6 = vld [vmem:[#allocation5 + $0x18] sm:$0xff]   ;;  %v947_v7 = vld [vmem:[#allocation5 + $0x10] sm:$0xff]   ;;  %v1290_v14 = vshrl.u32 %v303_v13, 7  ;;  %s273_s6 = scalar_select %p272_p3, %s1159_s22, 2  ;;  %v483_v59 = vand.u32 127, %v303_v13 }
  0x4a   : > { %843 = vmatprep.subr.bf16.mxu0 %v943_v1  ;;  %866 = vmatprep.subr.bf16.mxu1 %v943_v1  ;;  %v948_v8 = vld [vmem:[#allocation5 + $0x8] sm:$0xff]   ;;  %v949_v9 = vld [vmem:[#allocation5] sm:$0xff]   ;;  %v1285_v11 = vld [vmem:[%s1263_s23 + $0x18] sm:$0xff]   ;;  %vm535_vm3 = vcmask 1044484   ;;  %vm537_vm4 = vcmask 1045509   ;;  %vm539_vm5 = vcmask 1046534  }
  0x4b   : > { %857 = vmatprep.mubr.bf16.mxu0 %v1274_v4  ;;  %861 = vmatprep.mubr.bf16.mxu1 %v1277_v5  ;;  %v1282_v10 = vld [vmem:[%s1263_s23 + $0x8] sm:$0xff]   ;;  %v301_v15 = vld [vmem:[%s1384_s3] sm:$0x1]  ;;  %v1296_v17 = vsub.s32 0, %v1290_v14  ;;  %s811_s7 = sshll.u32 %s273_s6, 3  ;;  %v499_v62 = vsub.s32 %v483_v59, %v1290_v14  ;;  %vm541_vm6 = vcmask 1047559  }
  0x4c   : > { %941 = vset.pattern.permute.xlu0 %v1106_v12  ;;  %v302_v16 = vunpack.c.l.bf16 %v301_v15  ;;  %v452_v31 = vld [vmem:[%s1385_s4] sm:$0x1]  ;;  %s275_s15 = scalar_lea.vmem %s1382_s1, %s811_s7  ;;  %vm545_vm7 = vcmask 64512   ;;  %s810_s28 = sshll.u32 %s1259_s16, 3 }
  0x4d   : > { %844 = vmatpush3.bf16.msra.mxu0 %v943_v1  ;;  %874 = vmatpush3.bf16.msra.mxu1 %v943_v1  ;;  %v453_v35 = vunpack.c.l.bf16 %v452_v31  ;;  %v484_v54 = vld [vmem:[%s275_s15] sm:$0xff]  ;;  %v601_v31 = vsub.s32 6, %v1290_v14  ;;  %s825_s12 = sshll.u32 %s1159_s22, 7  ;;  %s270_s11 = scalar_lea.vmem [#allocation7], %s810_s28 }
  0x4e   : > { %845 = vmatprep.subr.bf16.mxu0 %v944_v2  ;;  %867 = vmatprep.subr.bf16.mxu1 %v944_v2  ;;  %v306_v18 = vrot.slane %v302_v16, %v1296_v17  ;;  %s708_s9 = sshll.u32 %s270_s11, 4  ;;  %s1344_s24 = scalar_lea.hbm %s1386_s5, %s825_s12  ;;  %s709_s9 = int_to_ptr.vmem [resolvable:$true] %s708_s9 }
  0x4f   : > { %v457_v37 = vrot.slane %v453_v35, %v1296_v17  ;;  %s695_s26 = scalar_lea.sflag [#allocation4], %s1259_s16  ;;  %s1032_s10 = scalar_lea.vmem %s709_s9, 128 }
  0x50   : > { %p1033_p10 = scmp.ne.s32.totalorder %s709_s9, %s1032_s10  ;;  %p1404_p7 = scmp.ne.s32.totalorder %s1397_s14, 0 }
  0x51   : > { %846 = vmatpush3.bf16.msra.mxu0 %v944_v2  ;;  %875 = vmatpush3.bf16.msra.mxu1 %v944_v2  ;;  %s1107_s22 = smov [#allocation7]  }
  0x52   : > { %847 = vmatprep.subr.bf16.mxu0 %v945_v3  ;;  %868 = vmatprep.subr.bf16.mxu1 %v945_v3  ;;  %p1034_p9 = pnand %p1033_p10, %p1404_p7  ;;  %s1036_s29 = sshll.u32 %s1107_s22, 4  ;;  %s1037_s29 = int_to_ptr.vmem [resolvable:$false] %s1036_s29 }
  0x53   : > { %s1038_s6 = scalar_lea.vmem %s1037_s29, 256  ;;  %p1039_p12 = scmp.lt.s32.totalorder %s709_s9, %s1037_s29 }
  0x54   : > { %p1035_p11 = pneg %p1034_p9  ;;  %p1040_p13 = scmp.lt.s32.totalorder %s1038_s6, %s1032_s10 }
  0x55   : > { %848 = vmatpush3.bf16.msra.mxu0 %v945_v3  ;;  %876 = vmatpush3.bf16.msra.mxu1 %v945_v3 }
  0x56   : > { %849 = vmatprep.subr.bf16.mxu0 %v946_v6  ;;  %869 = vmatprep.subr.bf16.mxu1 %v946_v6  ;;  %p1041_p0 = por %p1040_p13, %p1039_p12 }
  0x58   : > { %p1042_p5 = pnand %p1041_p0, %p1035_p11 }
  0x59   : > { %850 = vmatpush3.bf16.msra.mxu0 %v946_v6  ;;  %877 = vmatpush3.bf16.msra.mxu1 %v946_v6 }
  0x5a   : > { %851 = vmatprep.subr.bf16.mxu0 %v947_v7  ;;  %870 = vmatprep.subr.bf16.mxu1 %v947_v7 }
  0x5d   : > { %852 = vmatpush3.bf16.msra.mxu0 %v947_v7  ;;  %878 = vmatpush3.bf16.msra.mxu1 %v947_v7 }
  0x5e   : > { %853 = vmatprep.subr.bf16.mxu0 %v948_v8  ;;  %871 = vmatprep.subr.bf16.mxu1 %v948_v8 }
  0x61   : > { %854 = vmatpush3.bf16.msra.mxu0 %v948_v8  ;;  %879 = vmatpush3.bf16.msra.mxu1 %v948_v8 }
  0x62   : > { %855 = vmatprep.subr.bf16.mxu0 %v949_v9  ;;  %872 = vmatprep.subr.bf16.mxu1 %v949_v9 }
  0x65   : > { %856 = vmatpush3.bf16.msra.mxu0 %v949_v9  ;;  %880 = vmatpush3.bf16.msra.mxu1 %v949_v9 }
  0x68   : > { %858 = vmatmul.mubr.bf16.vlgmr.msra.gmra.mxu0 %v1282_v10  ;;  %862 = vmatmul.mubr.bf16.vlgmr.msra.gmra.mxu1 %v1285_v11 }
 0x128   : > { %v859_v19 = vpop.f32.mrf.mxu0  ;;  %v863_v20 = vpop.f32.mrf.mxu1 }
 0x129   : > { %v422_v21 = vadd.f32 %v859_v19, %v306_v18  ;;  %v438_v22 = vadd.f32 %v863_v20, %v306_v18 }
 0x12a   : > { %v413_v23 = vpop.f32.mrf.mxu0  ;;  %v429_v24 = vpop.f32.mrf.mxu1 }
 0x12b   : > { %958 = vtanh.f32 %v422_v21  ;;  %v414_v25 = vadd.f32 %v413_v23, %v306_v18  ;;  %v430_v28 = vadd.f32 %v429_v24, %v306_v18 }
 0x12c   : > { %960 = vtanh.f32 %v438_v22  ;;  %v860_v26 = vpop.f32.mrf.mxu0  ;;  %v864_v27 = vpop.f32.mrf.mxu1 }
 0x12d   : > { %v425_v29 = vadd.f32 %v860_v26, %v306_v18  ;;  %962 = vtanh.f32 %v414_v25  ;;  %v441_v34 = vadd.f32 %v864_v27, %v306_v18 }
 0x12e   : > { %v432_v30 = vpop.f32.mrf.mxu1  ;;  %v416_v32 = vpop.f32.mrf.mxu0 }
 0x12f   : > { %964 = vtanh.f32 %v425_v29  ;;  %v433_v33 = vadd.f32 %v432_v30, %v306_v18  ;;  %v417_v36 = vadd.f32 %v416_v32, %v306_v18 }
 0x130   : > { %966 = vtanh.f32 %v430_v28 }
 0x131   : > { %968 = vtanh.f32 %v433_v33 }
 0x132   : > { %970 = vtanh.f32 %v441_v34 }
 0x133   : > { %972 = vtanh.f32 %v417_v36  ;;  %v566_v36 = vsub.s32 1, %v1290_v14 }
 0x138   : > { %v959_v38 = vpop.eup %958 }
 0x139   : > { %v961_v39 = vpop.eup %960  ;;  %v460_v40 = vmul.f32 %v959_v38, %v457_v37  ;;  %v573_v38 = vsub.s32 2, %v1290_v14 }
 0x13a   : > { %v464_v41 = vmul.f32 %v961_v39, %v457_v37  ;;  %v963_v42 = vpop.eup %962 }
 0x13b   : > { %470 = vadd.xlane.f32.xlu1 %v460_v40  ;;  %v458_v46 = vmul.f32 %v963_v42, %v457_v37  ;;  %v580_v40 = vsub.s32 3, %v1290_v14  ;;  %v587_v42 = vsub.s32 4, %v1290_v14 }
 0x13c   : > { %v965_v43 = vpop.eup %964  ;;  %478 = vadd.xlane.f32.xlu0 %v464_v41 }
 0x13d   : > { %v461_v44 = vmul.f32 %v965_v43, %v457_v37  ;;  %v967_v45 = vpop.eup %966 }
 0x13e   : > { %v969_v47 = vpop.eup %968  ;;  %v462_v50 = vmul.f32 %v967_v45, %v457_v37  ;;  %v608_v45 = vsub.s32 7, %v1290_v14 }
 0x13f   : > { %472 = vadd.xlane.f32.xlu1 %v461_v44  ;;  %v463_v48 = vmul.f32 %v969_v47, %v457_v37  ;;  %v971_v49 = vpop.eup %970  ;;  %v594_v44 = vsub.s32 5, %v1290_v14  ;;  %v613_v47 = vunpack.c.l.bf16 %v1274_v4 }
 0x140   : > { %466 = vadd.xlane.f32.xlu0 %v458_v46  ;;  %v973_v51 = vpop.eup %972  ;;  %v465_v52 = vmul.f32 %v971_v49, %v457_v37  ;;  %v614_v49 = vunpack.c.h.bf16 %v1274_v4 }
 0x141   : > { %v459_v53 = vmul.f32 %v973_v51, %v457_v37 }
 0x143   : > { %476 = vadd.xlane.f32.xlu1 %v463_v48 }
 0x144   : > { %474 = vadd.xlane.f32.xlu0 %v462_v50 }
 0x147   : > { %480 = vadd.xlane.f32.xlu1 %v465_v52 }
 0x148   : > { %468 = vadd.xlane.f32.xlu0 %v459_v53  ;;  %v615_v53 = vunpack.c.l.bf16 %v1282_v10 }
 0x15e   : > { %486 = vperm.xlu0 %941, %v484_v54  }
 0x1c4   : > { %v471_v55 = vpop.xlane.xlu1 %470 }
 0x1c5   : > { %v479_v56 = vpop.xlane.xlu0 %478  ;;  %v508_v2 = vrot.slane %v471_v55, %v499_v62 }
 0x1c6   : > { %v524_v15 = vrot.slane %v479_v56, %v499_v62  ;;  %v619_v56 = vunpack.c.l.bf16 %v1285_v11 }
 0x1c8   : > { %v473_v57 = vpop.xlane.xlu1 %472 }
 0x1c9   : > { %v467_v58 = vpop.xlane.xlu0 %466  ;;  %v512_v3 = vrot.slane %v473_v57, %v499_v62 }
 0x1ca   : > { %v500_v0 = vrot.slane %v467_v58, %v499_v62 }
 0x1cc   : > { %v477_v61 = vpop.xlane.xlu1 %476 }
 0x1cd   : > { %v475_v60 = vpop.xlane.xlu0 %474  ;;  %v520_v12 = vrot.slane %v477_v61, %v499_v62  ;;  %v616_v61 = vunpack.c.h.bf16 %v1282_v10 }
 0x1ce   : > { %v516_v7 = vrot.slane %v475_v60, %v499_v62 }
 0x1d0   : > { %v481_v8 = vpop.xlane.xlu1 %480 }
 0x1d1   : > { %v469_v63 = vpop.xlane.xlu0 %468  ;;  %v528_v18 = vrot.slane %v481_v8, %v499_v62 }
 0x1d2   : > { %v504_v1 = vrot.slane %v469_v63, %v499_v62 }
 0x1d4   : > { %v530_v6 = vsel %vm529_vm0, %v504_v1, %v500_v0  ;;  %v617_v1 = vunpack.c.l.bf16 %v1277_v5 }
 0x1d5   : > { %v532_v9 = vsel %vm531_vm1, %v508_v2, %v530_v6 }
 0x1d6   : > { %v534_v13 = vsel %vm533_vm2, %v512_v3, %v532_v9 }
 0x1d7   : > { %v536_v16 = vsel %vm535_vm3, %v516_v7, %v534_v13 }
 0x1d8   : > { %v538_v19 = vsel %vm537_vm4, %v520_v12, %v536_v16 }
 0x1d9   : > { %v487_v20 = vpop.permute.xlu0 %486  ;;  %v540_v21 = vsel %vm539_vm5, %v524_v15, %v538_v19  ;;  %v618_v15 = vunpack.c.h.bf16 %v1277_v5 }
 0x1da   : > { %vm488_vm8 = vcmp.lt.s32.totalorder %v483_v59, %v487_v20  ;;  %v542_v22 = vsel %vm541_vm6, %v528_v18, %v540_v21 }
 0x1db   : > { %v544_v23 = vsel %vm488_vm8, %v542_v22, -1e+30 }
 0x1dc   : > { %v546_v24 = vsel %vm545_vm7, %v544_v23, -inf }
 0x1dd   : > { %547 = vmax.xlane.f32.xlu1 %v546_v24 }
 0x266   : > { %v548_v25 = vpop.xlane.xlu1 %547 }
 0x267   : > { %v549_v26 = vsub.f32 %v544_v23, %v548_v25 }
 0x269   : > { %v550_v27 = vmul.f32 1.442695, %v549_v26 }
 0x26b   : > { %974 = vpow2.f32 %v550_v27 }
 0x278   : > { %v975_v28 = vpop.eup %974 }
 0x279   : > { %v552_v29 = vsel %vm545_vm7, %v975_v28, 0.0 }
 0x27a   : > { %553 = vadd.xlane.f32.xlu1 %v552_v29 }
 0x303   : > { %v554_v30 = vpop.xlane.xlu1 %553 }
 0x304   : > { %976 = vrcp.f32 %v554_v30 }
 0x311   : > { %v977_v32 = vpop.eup %976 }
 0x312   : > { %v556_v33 = vmul.f32 %v977_v32, %v975_v28  ;;  %v620_v28 = vunpack.c.h.bf16 %v1285_v11 }
 0x314   : > { %v602_v34 = vrot.slane %v556_v33, %v601_v31  ;;  %v560_v35 = vrot.slane %v556_v33, %v1296_v17  ;;  %v567_v37 = vrot.slane %v556_v33, %v566_v36  ;;  %v574_v39 = vrot.slane %v556_v33, %v573_v38 }
 0x315   : > { %v581_v41 = vrot.slane %v556_v33, %v580_v40  ;;  %v588_v43 = vrot.slane %v556_v33, %v587_v42  ;;  %v595_v17 = vrot.slane %v556_v33, %v594_v44  ;;  %v609_v46 = vrot.slane %v556_v33, %v608_v45 }
 0x316   : > { %604 = vbcast.lane.b32.xlu0 %v602_v34, 256  ;;  %562 = vbcast.lane.b32.xlu1 %v560_v35, 256 }
 0x31a   : > { %569 = vbcast.lane.b32.xlu1 %v567_v37, 256 }
 0x31e   : > { %576 = vbcast.lane.b32.xlu1 %v574_v39, 256 }
 0x322   : > { %583 = vbcast.lane.b32.xlu1 %v581_v41, 256 }
 0x326   : > { %590 = vbcast.lane.b32.xlu1 %v588_v43, 256 }
 0x32a   : > { %597 = vbcast.lane.b32.xlu1 %v595_v17, 256 }
 0x32e   : > { %611 = vbcast.lane.b32.xlu1 %v609_v46, 256 }
 0x388   : > { %v563_v48 = vpop.permute.xlu1 %562  ;;  %v605_v58 = vpop.permute.xlu0 %604 }
 0x389   : > { %v621_v50 = vmul.f32 %v613_v47, %v563_v48  ;;  %v627_v63 = vmul.f32 %v619_v56, %v605_v58 }
 0x38b   : > { %v629_v54 = vrot.slane %v621_v50, 4  ;;  %v665_v8 = vrot.slane %v627_v63, 4 }
 0x38c   : > { %v570_v51 = vpop.permute.xlu1 %569 }
 0x38d   : > { %v622_v52 = vmul.f32 %v614_v49, %v570_v51  ;;  %v630_v60 = vadd.f32 %v629_v54, %v621_v50  ;;  %v666_v21 = vadd.f32 %v665_v8, %v627_v63 }
 0x38f   : > { %v635_v55 = vrot.slane %v622_v52, 4  ;;  %v631_v3 = vrot.slane %v630_v60, 2  ;;  %v667_v33 = vrot.slane %v666_v21, 2 }
 0x390   : > { %v577_v57 = vpop.permute.xlu1 %576 }
 0x391   : > { %v636_v14 = vadd.f32 %v635_v55, %v622_v52  ;;  %v623_v59 = vmul.f32 %v615_v53, %v577_v57  ;;  %v632_v19 = vadd.f32 %v631_v3, %v630_v60  ;;  %v668_v17 = vadd.f32 %v667_v33, %v666_v21 }
 0x393   : > { %v641_v62 = vrot.slane %v623_v59, 4  ;;  %v637_v0 = vrot.slane %v636_v14, 2  ;;  %v633_v29 = vrot.slane %v632_v19, 1  ;;  %v669_v53 = vrot.slane %v668_v17, 1 }
 0x394   : > { %v584_v4 = vpop.permute.xlu1 %583 }
 0x395   : > { %v642_v2 = vadd.f32 %v641_v62, %v623_v59  ;;  %v624_v6 = vmul.f32 %v616_v61, %v584_v4  ;;  %v638_v9 = vadd.f32 %v637_v0, %v636_v14  ;;  %v634_v40 = vadd.f32 %v633_v29, %v632_v19 }
 0x396   : > { %v670_v58 = vadd.f32 %v669_v53, %v668_v17 }
 0x397   : > { %v643_v7 = vrot.slane %v642_v2, 2  ;;  %v647_v12 = vrot.slane %v624_v6, 4  ;;  %v639_v22 = vrot.slane %v638_v9, 1 }
 0x398   : > { %v591_v13 = vpop.permute.xlu1 %590 }
 0x399   : > { %v644_v16 = vadd.f32 %v643_v7, %v642_v2  ;;  %v625_v18 = vmul.f32 %v617_v1, %v591_v13  ;;  %v648_v10 = vadd.f32 %v647_v12, %v624_v6  ;;  %v640_v5 = vadd.f32 %v639_v22, %v638_v9 }
 0x39b   : > { %v653_v20 = vrot.slane %v625_v18, 4  ;;  %v649_v23 = vrot.slane %v648_v10, 2  ;;  %v645_v25 = vrot.slane %v644_v16, 1  ;;  %v685_v11 = vsel %vm529_vm0, %v640_v5, %v634_v40 }
 0x39c   : > { %v598_v24 = vpop.permute.xlu1 %597 }
 0x39d   : > { %v654_v26 = vadd.f32 %v653_v20, %v625_v18  ;;  %v626_v27 = vmul.f32 %v618_v15, %v598_v24  ;;  %v650_v30 = vadd.f32 %v649_v23, %v648_v10  ;;  %v646_v36 = vadd.f32 %v645_v25, %v644_v16 }
 0x39f   : > { %v655_v31 = vrot.slane %v654_v26, 2  ;;  %v659_v32 = vrot.slane %v626_v27, 4  ;;  %v651_v34 = vrot.slane %v650_v30, 1  ;;  %v686_v45 = vsel %vm531_vm1, %v646_v36, %v685_v11 }
 0x3a0   : > { %v612_v35 = vpop.permute.xlu1 %611 }
 0x3a1   : > { %v656_v37 = vadd.f32 %v655_v31, %v654_v26  ;;  %v660_v38 = vadd.f32 %v659_v32, %v626_v27  ;;  %v628_v39 = vmul.f32 %v620_v28, %v612_v35  ;;  %v652_v41 = vadd.f32 %v651_v34, %v650_v30 }
 0x3a3   : > { %v657_v42 = vrot.slane %v656_v37, 1  ;;  %v661_v43 = vrot.slane %v660_v38, 2  ;;  %v671_v44 = vrot.slane %v628_v39, 4  ;;  %v687_v49 = vsel %vm533_vm2, %v652_v41, %v686_v45 }
 0x3a5   : > { %v658_v46 = vadd.f32 %v657_v42, %v656_v37  ;;  %v662_v47 = vadd.f32 %v661_v43, %v660_v38  ;;  %v672_v48 = vadd.f32 %v671_v44, %v628_v39 }
 0x3a7   : > { %v688_v50 = vsel %vm535_vm3, %v658_v46, %v687_v49  ;;  %v663_v51 = vrot.slane %v662_v47, 1  ;;  %v673_v52 = vrot.slane %v672_v48, 2 }
 0x3a9   : > { %v664_v54 = vadd.f32 %v663_v51, %v662_v47  ;;  %v674_v55 = vadd.f32 %v673_v52, %v672_v48 }
 0x3ab   : > { %v689_v56 = vsel %vm537_vm4, %v664_v54, %v688_v50  ;;  %v675_v57 = vrot.slane %v674_v55, 1 }
 0x3ac   : > { %v690_v59 = vsel %vm539_vm5, %v670_v58, %v689_v56 }
 0x3ad   : > { %v676_v14 = vadd.f32 %v675_v57, %v674_v55 }
 0x3af   : > { %v691_v60 = vsel %vm541_vm6, %v676_v14, %v690_v59 }
 0x3b0   : > { %693 = vst [vmem:[%s270_s11] sm:$0xff] %v691_v60 }
 0x3b1   : > { %1045 = shalt.err (!%p1042_p5)
}
 0x3b2   : > { %s1046_s7 = scalar_lea.hbm %s1344_s24, 128  ;;  %s1050_s27 = scalar_lea.hbm %s1386_s5, 384 }
 0x3b3   : > { %p1047_p2 = scmp.ne.s32.totalorder %s1344_s24, %s1046_s7  ;;  %p1051_p6 = scmp.lt.s32.totalorder %s1344_s24, %s1386_s5 }
 0x3b4   : > { %p1052_p8 = scmp.lt.s32.totalorder %s1050_s27, %s1046_s7 }
 0x3b5   : > { %p1048_p1 = pnand %p1047_p2, %p1404_p7 }
 0x3b6   : > { %p1053_p3 = por %p1052_p8, %p1051_p6 }
 0x3b7   : > { %p1049_p4 = pneg %p1048_p1 }
 0x3b9   : > { %p1054_p10 = pnand %p1053_p3, %p1049_p4 }
 0x3bb   : > { %1057 = shalt.err (!%p1054_p10)
}
 0x3bc   : > { %887 = dma.vmem_to_hbm [thread:$0]  (%p1404_p7), %s709_s9, 128, %s1344_s24, %s695_s26  }
 0x3bd PF: > { %p904_p9 = scmp.ge.s32.totalorder %s1100_s21, 2  ;;  %s720_s12 = sand.u32 1, %s1088_s18  }
 0x3be   : > { %p1405_p11 = scmp.ne.s32.totalorder %s1393_s25, 0  ;;  %s721_s11 = scalar_lea.sflag [#allocation4], %s720_s12 }
 0x3c0   : > { %p898_p12 = pnand %p904_p9, %p1405_p11 }
 0x3c2   : > { %p899_p13 = pneg %p898_p12 }
 0x3c4   : > { %1083 = dma.done.wait (%p899_p13), %s721_s11, 128  }
 0x3c5   : > { %1085 = vsyncadd (%p899_p13), %s721_s11, 4294967168  ;;  %p19_p0 = scmp.ge.s32.totalorder %s1191_s30, 5   ;;  %s1406_s18 = smov %s1092_s19 }
 0x3c6   : > { %s1407_s19 = smov %s1096_s20  ;;  %s1408_s20 = smov %s1211_s13 }
 0x3c7   : > { %s1409_s21 = smov %s1191_s30  ;;  %21 = sbr.rel (!%p19_p0) target bundleno = 6 (0x6), region = 92 }
 0x3cc   :  { %726 = vsyncpa [#allocation3], 1 }
 0x3cd   :  { %728 = vsyncpa [#allocation3 + $0x1], 1 }
 0x3ce   :  { %729 = vsyncpa [#allocation6], 1 }
 0x3cf   :  { %730 = vsyncpa [#allocation4], 1 }
 0x3d0   :  { %732 = vsyncpa [#allocation4 + $0x1], 1 }

</bundles_post_ra>
